<compile_context>
chip_gen: v6e
topology: v6e:2x2x1
jax: 0.10.0
libtpu: 0.0.40
codegen_flags: <defaults>
</compile_context>

<pallas_src>
import jax
import jax.numpy as jnp
from jax.experimental import pallas as pl
from jax.experimental.pallas import tpu as pltpu


def _softplus(z):
    # numerically stable softplus in f32 (VPU + EUP); EUP has large slack vs.
    # the matmul/DMA path at these shapes.
    return jnp.maximum(z, 0.0) + jnp.log1p(jnp.exp(-jnp.abs(z)))


def scorenet_kernel(x_ref, w1_ref, b1_ref, w2_ref, b2_ref, w3_ref, b3_ref, o_ref):
    # x tile: (TM, D) f32 -> cast to bf16 in-kernel (free filler, no extra HBM pass).
    x = x_ref[...].astype(jnp.bfloat16)
    h1 = jnp.dot(x, w1_ref[...], preferred_element_type=jnp.float32)          # (TM, H) f32
    h1 = _softplus(h1 + b1_ref[...])
    h2 = jnp.dot(h1.astype(jnp.bfloat16), w2_ref[...],
                 preferred_element_type=jnp.float32)                          # (TM, H) f32
    h2 = _softplus(h2 + b2_ref[...])
    out = jnp.dot(h2.astype(jnp.bfloat16), w3_ref[...],
                  preferred_element_type=jnp.float32)                         # (TM, D) f32
    o_ref[...] = (out + b3_ref[...]).astype(o_ref.dtype)


def _round_up(x, m):
    return (x + m - 1) // m * m


def scorenet_forward(x, params, *, block_m=None, out_dtype=None):
    """Pallas implementation of ScoreNet.forward (i.e. scorenet(x))."""
    w1, b1, w2, b2, w3, b3 = params
    N, D = x.shape
    H = w1.shape[1]
    if out_dtype is None:
        out_dtype = x.dtype  # f32 parity with the torch module; pass bf16 to cut writeback.

    # Weights as bf16 matmul operands (fetched once, VMEM-resident), biases f32.
    w1b, w2b, w3b = (w.astype(jnp.bfloat16) for w in (w1, w2, w3))

    # Row-tile size: big tiles amortize the ~0.35 us per-step overhead; keep a
    # multiple of 256 for real batches but >= 2 grid steps so v7x's second TC
    # gets work; tiny demo batches just round to the f32 sublane multiple (8).
    if block_m is None:
        if N <= 512:
            block_m = _round_up(min(N, 256), 8)
        else:
            block_m = min(1024, _round_up(pl.cdiv(N, 2), 256))
    grid = (pl.cdiv(N, block_m),)  # last block partially masked by Pallas

    out_itemsize = jnp.dtype(out_dtype).itemsize
    x_itemsize = jnp.dtype(x.dtype).itemsize

    # VMEM budget: single-buffered bf16 weights + f32 biases (Buffered(1)),
    # double-buffered x / out tiles, f32 intermediates; 2x margin + 8 MiB for
    # compiler scratch.  Sized explicitly so we never request all of v7x's 64 MiB.
    weight_bytes = 2 * (D * H + H * H + H * D) + 4 * (2 * H + D)
    tile_bytes = 2 * block_m * D * (x_itemsize + out_itemsize)      # double-buffered in/out
    interm_bytes = 3 * block_m * max(H, D) * 4
    vmem_limit = int(2 * (weight_bytes + tile_bytes + interm_bytes)) + (8 << 20)

    flops = 2 * N * (D * H + H * H + H * D)
    transcendentals = 4 * N * H                     # 2 softplus layers x 2 transcendentals/elem
    bytes_accessed = N * D * x_itemsize + weight_bytes + N * D * out_itemsize

    def resident(arr):
        nd = arr.ndim
        # Constant index_map -> weight stays VMEM-resident; single buffer (no
        # point double-buffering a block that never changes).
        return pl.BlockSpec(arr.shape, lambda i: (0,) * nd,
                            pipeline_mode=pl.Buffered(1))

    out = pl.pallas_call(
        scorenet_kernel,
        out_shape=jax.ShapeDtypeStruct((N, D), out_dtype),
        grid=grid,
        in_specs=[
            pl.BlockSpec((block_m, D), lambda i: (i, 0)),   # x: tiled over rows
            resident(w1b), resident(b1),
            resident(w2b), resident(b2),
            resident(w3b), resident(b3),
        ],
        out_specs=pl.BlockSpec((block_m, D), lambda i: (i, 0)),
        compiler_params=pltpu.CompilerParams(
            dimension_semantics=("parallel",),
            vmem_limit_bytes=vmem_limit,
        ),
        cost_estimate=pl.CostEstimate(
            flops=flops,
            transcendentals=transcendentals,
            bytes_accessed=bytes_accessed,
        ),
    )(x, w1b, b1, w2b, b2, w3b, b3)
    return out


def init_params(key, d_in, d_hidden):
    """Deterministic synthetic parameter init (matches nn.Linear shapes)."""
    ks = jax.random.split(key, 6)

    def lin(kw, kb, fan_in, fan_out):
        bound = 1.0 / jnp.sqrt(fan_in)
        w = jax.random.uniform(kw, (fan_in, fan_out), jnp.float32, -bound, bound)
        b = jax.random.uniform(kb, (1, fan_out), jnp.float32, -bound, bound)
        return w, b

    w1, b1 = lin(ks[0], ks[1], d_in, d_hidden)
    w2, b2 = lin(ks[2], ks[3], d_hidden, d_hidden)
    w3, b3 = lin(ks[4], ks[5], d_hidden, d_in)
    return (w1, b1, w2, b2, w3, b3)


def scorenet_forward_ref(x, params):
    """Pure-JAX reference mirroring the kernel's numerics (bf16 operands, f32 acc)."""
    w1, b1, w2, b2, w3, b3 = params
    xb = x.astype(jnp.bfloat16)
    w1b, w2b, w3b = (w.astype(jnp.bfloat16) for w in (w1, w2, w3))
    h1 = _softplus(jnp.dot(xb, w1b, preferred_element_type=jnp.float32) + b1)
    h2 = _softplus(jnp.dot(h1.astype(jnp.bfloat16), w2b,
                           preferred_element_type=jnp.float32) + b2)
    return jnp.dot(h2.astype(jnp.bfloat16), w3b,
                   preferred_element_type=jnp.float32) + b3


if __name__ == "__main__":
    # Small shapes: N=8 images, D=16*16=256 flattened pixels, hidden=128.
    # (Note: if the real flattened D is not a 128-multiple (e.g. MNIST 784),
    #  pad D to the next 128-multiple at parameter-prep time for lane-dense stores.)
    N, D, H = 8, 256, 128
    key = jax.random.PRNGKey(0)
    k_x, k_p = jax.random.split(key)
    x = jax.random.normal(k_x, (N, D), jnp.float32)
    params = init_params(k_p, D, H)

    out = scorenet_forward(x, params)
    out = jax.block_until_ready(out)

    ref = scorenet_forward_ref(x, params)
    assert out.shape == (N, D)
    assert jnp.allclose(out, ref, atol=1e-3, rtol=1e-3), "mismatch vs JAX reference"

    # TODO(synk): perturb/sample/get_loss/get_sigmas use torch RNG and host-side
    # Langevin loops (training/sampling utilities), not part of forward(); not ported.
    print("KERNEL_OK")
</pallas_src>

<mosaic_0001>
module attributes {stable_mosaic.version = 11 : i64} {
  func.func @scorenet_kernel(%arg0: i32, %arg1: memref<8x256xf32, #tpu.memory_space<vmem>>, %arg2: memref<256x128xbf16, #tpu.memory_space<vmem>>, %arg3: memref<1x128xf32, #tpu.memory_space<vmem>>, %arg4: memref<128x128xbf16, #tpu.memory_space<vmem>>, %arg5: memref<1x128xf32, #tpu.memory_space<vmem>>, %arg6: memref<128x256xbf16, #tpu.memory_space<vmem>>, %arg7: memref<1x256xf32, #tpu.memory_space<vmem>>, %arg8: memref<8x256xf32, #tpu.memory_space<vmem>>) attributes {dimension_semantics = [#tpu.dimension_semantics<parallel>], iteration_bounds = array<i64: 1>, scalar_prefetch = 0 : i64, scratch_operands = 0 : i64, tpu.core_type = #tpu.core_type<tc>, window_params = [{transform_indices = @transform_0, window_bounds = array<i64: 8, 256>}, {pipeline_mode = #tpu.pipeline_mode<synchronous>, transform_indices = @transform_1, window_bounds = array<i64: 256, 128>}, {pipeline_mode = #tpu.pipeline_mode<synchronous>, transform_indices = @transform_2, window_bounds = array<i64: 1, 128>}, {pipeline_mode = #tpu.pipeline_mode<synchronous>, transform_indices = @transform_3, window_bounds = array<i64: 128, 128>}, {pipeline_mode = #tpu.pipeline_mode<synchronous>, transform_indices = @transform_4, window_bounds = array<i64: 1, 128>}, {pipeline_mode = #tpu.pipeline_mode<synchronous>, transform_indices = @transform_5, window_bounds = array<i64: 128, 256>}, {pipeline_mode = #tpu.pipeline_mode<synchronous>, transform_indices = @transform_6, window_bounds = array<i64: 1, 256>}, {transform_indices = @transform_7, window_bounds = array<i64: 8, 256>}]} {
    %c0 = arith.constant 0 : index
    %c0_0 = arith.constant 0 : index
    %0 = vector.load %arg1[%c0, %c0_0] : memref<8x256xf32, #tpu.memory_space<vmem>>, vector<8x256xf32>
    %1 = arith.truncf %0 : vector<8x256xf32> to vector<8x256xbf16>
    %c0_1 = arith.constant 0 : index
    %c0_2 = arith.constant 0 : index
    %2 = vector.load %arg2[%c0_1, %c0_2] : memref<256x128xbf16, #tpu.memory_space<vmem>>, vector<256x128xbf16>
    %cst = arith.constant dense<0.000000e+00> : vector<8x128xf32>
    %3 = tpu.matmul %1, %2, %cst {dimension_numbers = #tpu.dot_dimension_numbers<[1], [0], [0], [1], [0, 0, 1, 1], [], []>} : vector<8x256xbf16>, vector<256x128xbf16>, vector<8x128xf32> -> vector<8x128xf32>
    %c0_3 = arith.constant 0 : index
    %c0_4 = arith.constant 0 : index
    %4 = vector.load %arg3[%c0_3, %c0_4] : memref<1x128xf32, #tpu.memory_space<vmem>>, vector<1x128xf32>
    %5 = vector.broadcast %4 : vector<1x128xf32> to vector<8x128xf32>
    %6 = arith.addf %3, %5 : vector<8x128xf32>
    %cst_5 = arith.constant 0.000000e+00 : f32
    %7 = vector.broadcast %cst_5 : f32 to vector<8x128xf32>
    %8 = arith.maximumf %6, %7 : vector<8x128xf32>
    %9 = math.absf %6 : vector<8x128xf32>
    %cst_6 = arith.constant 0.000000e+00 : f32
    %10 = vector.broadcast %cst_6 : f32 to vector<8x128xf32>
    %11 = arith.subf %10, %9 : vector<8x128xf32>
    %12 = math.exp %11 : vector<8x128xf32>
    %13 = math.log1p %12 : vector<8x128xf32>
    %14 = arith.addf %8, %13 : vector<8x128xf32>
    %15 = arith.truncf %14 : vector<8x128xf32> to vector<8x128xbf16>
    %c0_7 = arith.constant 0 : index
    %c0_8 = arith.constant 0 : index
    %16 = vector.load %arg4[%c0_7, %c0_8] : memref<128x128xbf16, #tpu.memory_space<vmem>>, vector<128x128xbf16>
    %cst_9 = arith.constant dense<0.000000e+00> : vector<8x128xf32>
    %17 = tpu.matmul %15, %16, %cst_9 {dimension_numbers = #tpu.dot_dimension_numbers<[1], [0], [0], [1], [0, 0, 1, 1], [], []>} : vector<8x128xbf16>, vector<128x128xbf16>, vector<8x128xf32> -> vector<8x128xf32>
    %c0_10 = arith.constant 0 : index
    %c0_11 = arith.constant 0 : index
    %18 = vector.load %arg5[%c0_10, %c0_11] : memref<1x128xf32, #tpu.memory_space<vmem>>, vector<1x128xf32>
    %19 = vector.broadcast %18 : vector<1x128xf32> to vector<8x128xf32>
    %20 = arith.addf %17, %19 : vector<8x128xf32>
    %cst_12 = arith.constant 0.000000e+00 : f32
    %21 = vector.broadcast %cst_12 : f32 to vector<8x128xf32>
    %22 = arith.maximumf %20, %21 : vector<8x128xf32>
    %23 = math.absf %20 : vector<8x128xf32>
    %cst_13 = arith.constant 0.000000e+00 : f32
    %24 = vector.broadcast %cst_13 : f32 to vector<8x128xf32>
    %25 = arith.subf %24, %23 : vector<8x128xf32>
    %26 = math.exp %25 : vector<8x128xf32>
    %27 = math.log1p %26 : vector<8x128xf32>
    %28 = arith.addf %22, %27 : vector<8x128xf32>
    %29 = arith.truncf %28 : vector<8x128xf32> to vector<8x128xbf16>
    %c0_14 = arith.constant 0 : index
    %c0_15 = arith.constant 0 : index
    %30 = vector.load %arg6[%c0_14, %c0_15] : memref<128x256xbf16, #tpu.memory_space<vmem>>, vector<128x256xbf16>
    %cst_16 = arith.constant dense<0.000000e+00> : vector<8x256xf32>
    %31 = tpu.matmul %29, %30, %cst_16 {dimension_numbers = #tpu.dot_dimension_numbers<[1], [0], [0], [1], [0, 0, 1, 1], [], []>} : vector<8x128xbf16>, vector<128x256xbf16>, vector<8x256xf32> -> vector<8x256xf32>
    %c0_17 = arith.constant 0 : index
    %c0_18 = arith.constant 0 : index
    %32 = vector.load %arg7[%c0_17, %c0_18] : memref<1x256xf32, #tpu.memory_space<vmem>>, vector<1x256xf32>
    %33 = vector.broadcast %32 : vector<1x256xf32> to vector<8x256xf32>
    %34 = arith.addf %31, %33 : vector<8x256xf32>
    %c0_19 = arith.constant 0 : index
    %c0_20 = arith.constant 0 : index
    %35 = vector.load %arg8[%c0_19, %c0_20] : memref<8x256xf32, #tpu.memory_space<vmem>>, vector<8x256xf32>
    tpu.vector_store %arg8[%c0_19, %c0_20], %34 {strides = array<i32>} : memref<8x256xf32, #tpu.memory_space<vmem>>, vector<8x256xf32>,
    return
  }
  func.func @transform_0(%arg0: i32) -> (i32, i32) {
    %c0_i32 = arith.constant 0 : i32
    %c0_i32_0 = arith.constant 0 : i32
    return %arg0, %c0_i32 : i32, i32
  }
  func.func @transform_1(%arg0: i32) -> (i32, i32) {
    %c0_i32 = arith.constant 0 : i32
    %c0_i32_0 = arith.constant 0 : i32
    %c0_i32_1 = arith.constant 0 : i32
    return %c0_i32, %c0_i32_0 : i32, i32
  }
  func.func @transform_2(%arg0: i32) -> (i32, i32) {
    %c0_i32 = arith.constant 0 : i32
    %c0_i32_0 = arith.constant 0 : i32
    %c0_i32_1 = arith.constant 0 : i32
    return %c0_i32, %c0_i32_0 : i32, i32
  }
  func.func @transform_3(%arg0: i32) -> (i32, i32) {
    %c0_i32 = arith.constant 0 : i32
    %c0_i32_0 = arith.constant 0 : i32
    %c0_i32_1 = arith.constant 0 : i32
    return %c0_i32, %c0_i32_0 : i32, i32
  }
  func.func @transform_4(%arg0: i32) -> (i32, i32) {
    %c0_i32 = arith.constant 0 : i32
    %c0_i32_0 = arith.constant 0 : i32
    %c0_i32_1 = arith.constant 0 : i32
    return %c0_i32, %c0_i32_0 : i32, i32
  }
  func.func @transform_5(%arg0: i32) -> (i32, i32) {
    %c0_i32 = arith.constant 0 : i32
    %c0_i32_0 = arith.constant 0 : i32
    %c0_i32_1 = arith.constant 0 : i32
    return %c0_i32, %c0_i32_0 : i32, i32
  }
  func.func @transform_6(%arg0: i32) -> (i32, i32) {
    %c0_i32 = arith.constant 0 : i32
    %c0_i32_0 = arith.constant 0 : i32
    %c0_i32_1 = arith.constant 0 : i32
    return %c0_i32, %c0_i32_0 : i32, i32
  }
  func.func @transform_7(%arg0: i32) -> (i32, i32) {
    %c0_i32 = arith.constant 0 : i32
    %c0_i32_0 = arith.constant 0 : i32
    return %arg0, %c0_i32 : i32, i32
  }
}

</mosaic_0001>

<bundles_post_ra>
// kernel: tpu_custom_call.1
= control target key start
LH: loop header
LB: loop body
LE: loop exit
PB: predicated region body
PF: predicated region fallthrough
CT: control target
= control target key end

     0   :  { %12 = vsyncpa [#allocation3], 0  ;;  %s916_s0 = inlined_call_operand.hbm [shape: f32[8,256], index: 0, kind: input, shape index: {}]   ;;  %s917_s1 = inlined_call_operand.hbm [shape: bf16[256,128], index: 1, kind: input, shape index: {}]   ;;  %s918_s2 = inlined_call_operand.vmem [shape: f32[1,128], index: 2, kind: input, shape index: {}]   ;;  %s919_s3 = inlined_call_operand.hbm [shape: bf16[128,128], index: 3, kind: input, shape index: {}]   ;;  %s920_s4 = inlined_call_operand.vmem [shape: f32[1,128], index: 4, kind: input, shape index: {}]   ;;  %s921_s5 = inlined_call_operand.hbm [shape: bf16[128,256], index: 5, kind: input, shape index: {}]   ;;  %s922_s6 = inlined_call_operand.vmem [shape: f32[1,256], index: 6, kind: input, shape index: {}]   ;;  %s923_s7 = inlined_call_operand.hbm [shape: f32[8,256], index: 7, kind: output, shape index: {}]  }
   0x1   :  { %13 = vsyncpa [#allocation6], 0 }
   0x2   :  { %14 = vsyncpa [#allocation9], 0 }
   0x3   :  { %15 = vsyncpa [#allocation4], 0  ;;  %s840_s24 = smov [#allocation5]  }
   0x4   :  { %s31_s25 = sshll.u32 %s840_s24, 4  ;;  %s32_s25 = int_to_ptr.vmem [resolvable:$true] %s31_s25 }
   0x5   :  { %s740_s26 = scalar_lea.vmem %s32_s25, 2048  ;;  %p745_p1 = scmp.lt.s32.totalorder %s32_s25, %s32_s25 }
   0x6   :  { %p741_p0 = scmp.ne.s32.totalorder %s32_s25, %s740_s26  ;;  %p746_p2 = scmp.lt.s32.totalorder %s740_s26, %s740_s26 }
   0x8   :  { %p747_p3 = por %p746_p2, %p745_p1 }
   0xa   :  { %p748_p4 = pnand %p747_p3, %p741_p0 }
   0xc   :  { %751 = shalt.err (!%p748_p4)
}
   0xd   :  { %s841_s27 = smov 64   ;;  %s842_s28 = smov 4  }
   0xe   :  { %37 = dma.hbm_to_vmem [thread:$0]  %s917_s1, 2048, %s32_s25, [#allocation6], %s841_s27, %s841_s27, %s842_s28  }
   0xf   :  { %s843_s8 = smov [#allocation2]   ;;  %s844_s10 = smov [#allocation7]  }
  0x10   :  { %s22_s9 = sshll.u32 %s843_s8, 4  ;;  %s45_s11 = sshll.u32 %s844_s10, 4  ;;  %s23_s9 = int_to_ptr.vmem [resolvable:$true] %s22_s9  ;;  %s46_s11 = int_to_ptr.vmem [resolvable:$true] %s45_s11 }
  0x11   :  { %s760_s12 = scalar_lea.vmem %s23_s9, 256  ;;  %p765_p6 = scmp.lt.s32.totalorder %s23_s9, %s23_s9 }
  0x12   :  { %p761_p5 = scmp.ne.s32.totalorder %s23_s9, %s760_s12  ;;  %p766_p7 = scmp.lt.s32.totalorder %s760_s12, %s760_s12 }
  0x14   :  { %p767_p8 = por %p766_p7, %p765_p6 }
  0x16   :  { %p768_p9 = pnand %p767_p8, %p761_p5 }
  0x18   :  { %771 = shalt.err (!%p768_p9)
}
  0x19   :  { %25 = dma.hbm_to_vmem [thread:$0]  %s916_s0, 256, %s23_s9, [#allocation3]  }
  0x1a   :  { %s780_s15 = scalar_lea.vmem %s46_s11, 1024  ;;  %p785_p11 = scmp.lt.s32.totalorder %s46_s11, %s46_s11 }
  0x1b   :  { %p781_p10 = scmp.ne.s32.totalorder %s46_s11, %s780_s15  ;;  %p786_p12 = scmp.lt.s32.totalorder %s780_s15, %s780_s15 }
  0x1d   :  { %p787_p13 = por %p786_p12, %p785_p11 }
  0x1f   :  { %p788_p0 = pnand %p787_p13, %p781_p10 }
  0x21   :  { %791 = shalt.err (!%p788_p0)
}
  0x22   :  { %51 = dma.hbm_to_vmem [thread:$0]  %s919_s3, 1024, %s46_s11, [#allocation6], %s841_s27, %s841_s27, %s842_s28  }
  0x23   :  { %s845_s17 = smov [#allocation8]  }
  0x24   :  { %s59_s18 = sshll.u32 %s845_s17, 4  ;;  %s60_s18 = int_to_ptr.vmem [resolvable:$true] %s59_s18 }
  0x25   :  { %s800_s19 = scalar_lea.vmem %s60_s18, 2048  ;;  %p805_p2 = scmp.lt.s32.totalorder %s60_s18, %s60_s18 }
  0x26   :  { %p801_p1 = scmp.ne.s32.totalorder %s60_s18, %s800_s19  ;;  %p806_p3 = scmp.lt.s32.totalorder %s800_s19, %s800_s19 }
  0x28   :  { %p807_p4 = por %p806_p3, %p805_p2 }
  0x2a   :  { %p808_p5 = pnand %p807_p4, %p801_p1 }
  0x2c   :  { %811 = shalt.err (!%p808_p5)
}
  0x2d   :  { %s846_s0 = smov 128   ;;  %s847_s20 = smov 8  }
  0x2e   :  { %65 = dma.hbm_to_vmem [thread:$0]  %s921_s5, 2048, %s60_s18, [#allocation9], %s846_s0, %s846_s0, %s847_s20  }
  0x2f   :  { %832 = dma.done.wait [#allocation3], 256  }
  0x30   :  { %833 = vsyncadd [#allocation3], 4294967040 }
  0x31   :  { %834 = dma.done.wait [#allocation6], 3072  }
  0x32   :  { %835 = vsyncadd [#allocation6], 4294964224 }
  0x33   :  { %836 = dma.done.wait [#allocation9], 2048  }
  0x34   :  { %837 = vsyncadd [#allocation9], 4294965248  ;;  %v676_v0 = vld [vmem:[#allocation5 + $0x78] sm:$0xff]   ;;  %v678_v2 = vld [vmem:[#allocation5 + $0x70] sm:$0xff]   ;;  %v848_v21 = vmov 0.0   ;;  %vm849_vm0 = vmmov 0  }
  0x35   :  { %v677_v1 = vld [vmem:[#allocation5 + $0x38] sm:$0xff]   ;;  %613 = vmatprep.subr.bf16.mxu0 %v676_v0  ;;  %v679_v3 = vld [vmem:[#allocation5 + $0x30] sm:$0xff]   ;;  %v680_v4 = vld [vmem:[#allocation5 + $0x68] sm:$0xff]   ;;  %644 = vmatprep.subr.bf16.mxu1 %v848_v21  ;;  %s851_s25 = smov [#allocation10]  }
  0x36   :  { %614 = vmatpush3.bf16.msra.mxu0 %v677_v1  ;;  %v681_v5 = vld [vmem:[#allocation5 + $0x28] sm:$0xff]   ;;  %v682_v6 = vld [vmem:[#allocation5 + $0x60] sm:$0xff]   ;;  %v684_v8 = vld [vmem:[#allocation5 + $0x58] sm:$0xff]   ;;  %660 = vmatprep.mubr.msk.bf16.mxu1 %vm849_vm0, %v848_v21  ;;  %s560_s26 = sshll.u32 %s851_s25, 4  ;;  %s561_s26 = int_to_ptr.vmem [resolvable:$true] %s560_s26 }
  0x37   :  { %615 = vmatprep.subr.bf16.mxu0 %v678_v2  ;;  %v683_v7 = vld [vmem:[#allocation5 + $0x20] sm:$0xff]   ;;  %v685_v9 = vld [vmem:[#allocation5 + $0x18] sm:$0xff]   ;;  %v686_v10 = vld [vmem:[#allocation5 + $0x50] sm:$0xff]   ;;  %s812_s27 = scalar_lea.vmem %s561_s26, 256  ;;  %p817_p7 = scmp.lt.s32.totalorder %s561_s26, %s561_s26 }
  0x38   :  { %v82_v11 = vld [vmem:[#allocation2 + $0x8] sm:$0xff]  ;;  %v687_v12 = vld [vmem:[#allocation5 + $0x10] sm:$0xff]   ;;  %v688_v14 = vld [vmem:[#allocation5 + $0x48] sm:$0xff]   ;;  %p813_p6 = scmp.ne.s32.totalorder %s561_s26, %s812_s27  ;;  %p818_p8 = scmp.lt.s32.totalorder %s812_s27, %s812_s27 }
  0x39   :  { %v84_v13 = vpack.c.bf16 %v82_v11, %v82_v11  ;;  %v689_v15 = vld [vmem:[#allocation5 + $0x8] sm:$0xff]   ;;  %v690_v16 = vld [vmem:[#allocation5 + $0x40] sm:$0xff]   ;;  %v81_v18 = vld [vmem:[#allocation2] sm:$0xff] }
  0x3a   :  { %616 = vmatpush3.bf16.msra.mxu0 %v679_v3  ;;  %v691_v17 = vld [vmem:[#allocation5] sm:$0xff]   ;;  %v83_v19 = vpack.c.bf16 %v81_v18, %v81_v18  ;;  %v692_v20 = vld [vmem:[#allocation7 + $0x38] sm:$0xff]   ;;  %v693_v22 = vld [vmem:[#allocation7 + $0x30] sm:$0xff]   ;;  %v850_v3 = vmov 0   ;;  %p819_p9 = por %p818_p8, %p817_p7 }
  0x3b   :  { %617 = vmatprep.subr.bf16.mxu0 %v680_v4  ;;  %252 = vmatprep.mubr.bf16.mxu0 %v84_v13  ;;  %v694_v23 = vld [vmem:[#allocation7 + $0x28] sm:$0xff]   ;;  %v695_v24 = vld [vmem:[#allocation7 + $0x20] sm:$0xff]   ;;  %v696_v25 = vld [vmem:[#allocation7 + $0x18] sm:$0xff]  }
  0x3c   :  { %645 = vmatpush3.bf16.msra.mxu1 %v692_v20  ;;  %v697_v26 = vld [vmem:[#allocation7 + $0x10] sm:$0xff]   ;;  %v698_v27 = vld [vmem:[#allocation7 + $0x8] sm:$0xff]   ;;  %v699_v28 = vld [vmem:[#allocation7] sm:$0xff]   ;;  %p820_p10 = pnand %p819_p9, %p813_p6 }
  0x3d   :  { %646 = vmatprep.subr.bf16.mxu1 %v848_v21  ;;  %v571_v30 = vld [vmem:[%s918_s2] ss:$0 sm:$0xff]  ;;  %v702_v51 = vld [vmem:[#allocation8 + $0x74] ss:$8 sps:$4 sm:$0xff]   ;;  %v705_v53 = vld [vmem:[#allocation8 + $0x64] ss:$8 sps:$4 sm:$0xff]  }
  0x3e   :  { %618 = vmatpush3.bf16.msra.mxu0 %v681_v5  ;;  %v700_v52 = vld [vmem:[#allocation8 + $0x70] ss:$8 sps:$4 sm:$0xff]   ;;  %v703_v54 = vld [vmem:[#allocation8 + $0x60] ss:$8 sps:$4 sm:$0xff]   ;;  %v708_v55 = vld [vmem:[#allocation8 + $0x54] ss:$8 sps:$4 sm:$0xff]  }
  0x3f   :  { %619 = vmatprep.subr.bf16.mxu0 %v682_v6  ;;  %v706_v56 = vld [vmem:[#allocation8 + $0x50] ss:$8 sps:$4 sm:$0xff]   ;;  %v711_v57 = vld [vmem:[#allocation8 + $0x44] ss:$8 sps:$4 sm:$0xff]   ;;  %v709_v58 = vld [vmem:[#allocation8 + $0x40] ss:$8 sps:$4 sm:$0xff]  }
  0x40   :  { %647 = vmatpush3.bf16.msra.mxu1 %v693_v22  ;;  %v714_v59 = vld [vmem:[#allocation8 + $0x34] ss:$8 sps:$4 sm:$0xff]   ;;  %v712_v60 = vld [vmem:[#allocation8 + $0x30] ss:$8 sps:$4 sm:$0xff]   ;;  %v717_v61 = vld [vmem:[#allocation8 + $0x24] ss:$8 sps:$4 sm:$0xff]  }
  0x41   :  { %648 = vmatprep.subr.bf16.mxu1 %v848_v21  ;;  %v715_v62 = vld [vmem:[#allocation8 + $0x20] ss:$8 sps:$4 sm:$0xff]   ;;  %v720_v63 = vld [vmem:[#allocation8 + $0x14] ss:$8 sps:$4 sm:$0xff]   ;;  %v718_v0 = vld [vmem:[#allocation8 + $0x10] ss:$8 sps:$4 sm:$0xff]  }
  0x42   :  { %620 = vmatpush3.bf16.msra.mxu0 %v683_v7  ;;  %v723_v1 = vld [vmem:[#allocation8 + $0x4] ss:$8 sps:$4 sm:$0xff]   ;;  %v721_v2 = vld [vmem:[#allocation8] ss:$8 sps:$4 sm:$0xff]   ;;  %v588_v4 = vld [vmem:[%s920_s4] ss:$0 sm:$0xff] }
  0x43   :  { %621 = vmatprep.subr.bf16.mxu0 %v684_v8 }
  0x44   :  { %649 = vmatpush3.bf16.msra.mxu1 %v694_v23 }
  0x45   :  { %650 = vmatprep.subr.bf16.mxu1 %v848_v21 }
  0x46   :  { %622 = vmatpush3.bf16.msra.mxu0 %v685_v9 }
  0x47   :  { %623 = vmatprep.subr.bf16.mxu0 %v686_v10 }
  0x48   :  { %651 = vmatpush3.bf16.msra.mxu1 %v695_v24 }
  0x49   :  { %652 = vmatprep.subr.bf16.mxu1 %v848_v21 }
  0x4a   :  { %624 = vmatpush3.bf16.msra.mxu0 %v687_v12 }
  0x4b   :  { %625 = vmatprep.subr.bf16.mxu0 %v688_v14 }
  0x4c   :  { %653 = vmatpush3.bf16.msra.mxu1 %v696_v25  ;;  %v421_v25 = vlaneseq }
  0x4d   :  { %654 = vmatprep.subr.bf16.mxu1 %v848_v21 }
  0x4e   :  { %626 = vmatpush3.bf16.msra.mxu0 %v689_v15 }
  0x4f   :  { %627 = vmatprep.subr.bf16.mxu0 %v690_v16 }
  0x50   :  { %655 = vmatpush3.bf16.msra.mxu1 %v697_v26  ;;  %v422_v26 = vshrl.u32 %v421_v25, 7 }
  0x51   :  { %656 = vmatprep.subr.bf16.mxu1 %v848_v21 }
  0x52   :  { %628 = vmatpush3.bf16.msra.mxu0 %v691_v17 }
  0x53   :  { %511 = vmatprep.subr.bf16.mxu0 %v702_v51 }
  0x54   :  { %657 = vmatpush3.bf16.msra.mxu1 %v698_v27  ;;  %v423_v27 = vsub.s32 0, %v422_v26 }
  0x55   :  { %253 = vmatmul.mubr.bf16.vlgmr.msra.gmra.mxu0 %v83_v19  ;;  %658 = vmatprep.subr.bf16.mxu1 %v848_v21 }
  0x56   :  { %512 = vmatpush1.bf16.msra.mxu0 %v700_v52  ;;  %543 = vmatprep.mubr.bf16.mxu0 %v850_v3 }
  0x57   :  { %513 = vmatprep.subr.bf16.mxu0 %v705_v53 }
  0x58   :  { %659 = vmatpush3.bf16.msra.mxu1 %v699_v28  ;;  %v419_v28 = vld [vmem:[%s922_s6] sm:$0x3] }
  0x5a   :  { %514 = vmatpush1.bf16.msra.mxu0 %v703_v54 }
  0x5b   :  { %515 = vmatprep.subr.bf16.mxu0 %v708_v55 }
  0x5e   :  { %516 = vmatpush1.bf16.msra.mxu0 %v706_v56 }
  0x5f   :  { %517 = vmatprep.subr.bf16.mxu0 %v711_v57 }
  0x62   :  { %518 = vmatpush1.bf16.msra.mxu0 %v709_v58 }
  0x63   :  { %519 = vmatprep.subr.bf16.mxu0 %v714_v59 }
  0x66   :  { %520 = vmatpush1.bf16.msra.mxu0 %v712_v60 }
  0x67   :  { %521 = vmatprep.subr.bf16.mxu0 %v717_v61 }
  0x6a   :  { %522 = vmatpush1.bf16.msra.mxu0 %v715_v62 }
  0x6b   :  { %523 = vmatprep.subr.bf16.mxu0 %v720_v63 }
  0x6e   :  { %524 = vmatpush1.bf16.msra.mxu0 %v718_v0 }
  0x6f   :  { %525 = vmatprep.subr.bf16.mxu0 %v723_v1 }
  0x72   :  { %526 = vmatpush1.bf16.msra.mxu0 %v721_v2 }
 0x115   :  { %v629_v29 = vpop.f32.mrf.mxu0 }
 0x117   :  { %v630_v31 = vpop.f32.mrf.mxu0 }
 0x118   :  { %v631_v32 = vadd.f32 %v630_v31, %v629_v29  ;;  %v427_v29 = vsub.s32 1, %v422_v26 }
 0x119   :  { %v632_v33 = vpop.f32.mrf.mxu0 }
 0x11a   :  { %v255_v34 = vadd.f32 %v631_v32, %v571_v30  ;;  %v424_v30 = vrot.slane %v419_v28, %v423_v27  ;;  %v428_v31 = vrot.slane %v419_v28, %v427_v29 }
 0x11b   :  { %v633_v35 = vpop.f32.mrf.mxu0 }
 0x11c   :  { %v261_v36 = vand.u32 2147483647, %v255_v34  ;;  %v260_v47 = vmax.f32 %v255_v34, 0.0 }
 0x11e   :  { %v262_v37 = vsub.f32 0.0, %v261_v36 }
 0x120   :  { %v263_v38 = vmul.f32 1.442695, %v262_v37 }
 0x122   :  { %724 = vpow2.f32 %v263_v38 }
 0x12f   :  { %v725_v39 = vpop.eup %724 }
 0x130   :  { %v265_v40 = vadd.f32 1.0, %v725_v39  ;;  %v268_v41 = vmul.f32 -0.5, %v725_v39  ;;  %v271_v43 = vand.u32 2147483647, %v725_v39 }
 0x132   :  { %726 = vlog2.f32 %v265_v40  ;;  %v269_v42 = vadd.f32 1.0, %v268_v41  ;;  %vm272_vm1 = vcmp.lt.f32.partialorder %v271_v43, 0.0004427343 }
 0x134   :  { %v270_v46 = vmul.f32 %v725_v39, %v269_v42 }
 0x13f   :  { %v727_v44 = vpop.eup %726 }
 0x140   :  { %v267_v45 = vmul.f32 0.6931472, %v727_v44 }
 0x142   :  { %v273_v48 = vsel %vm272_vm1, %v270_v46, %v267_v45 }
 0x143   :  { %v274_v49 = vadd.f32 %v273_v48, %v260_v47 }
 0x145   :  { %v275_v50 = vpack.c.bf16 %v274_v49, %v274_v49 }
 0x147   :  { %661 = vmatmul.mubr.bf16.vlgmr.msra.gmra.mxu1 %v275_v50 }
 0x207   :  { %v381_v5 = vpop.f32.mrf.mxu1 }
 0x208   :  { %v382_v6 = vadd.f32 %v588_v4, %v381_v5 }
 0x209   :  { %v662_v7 = vpop.f32.mrf.mxu1 }
 0x20a   :  { %v388_v8 = vand.u32 2147483647, %v382_v6  ;;  %v387_v21 = vmax.f32 %v382_v6, 0.0 }
 0x20b   :  { %v384_v9 = vpop.f32.mrf.mxu1 }
 0x20c   :  { %v389_v10 = vsub.f32 0.0, %v388_v8 }
 0x20d   :  { %v663_v11 = vpop.f32.mrf.mxu1 }
 0x20e   :  { %v390_v12 = vmul.f32 1.442695, %v389_v10 }
 0x210   :  { %728 = vpow2.f32 %v390_v12 }
 0x21d   :  { %v729_v13 = vpop.eup %728 }
 0x21e   :  { %v392_v14 = vadd.f32 1.0, %v729_v13  ;;  %v395_v15 = vmul.f32 -0.5, %v729_v13  ;;  %v398_v17 = vand.u32 2147483647, %v729_v13 }
 0x220   :  { %730 = vlog2.f32 %v392_v14  ;;  %v396_v16 = vadd.f32 1.0, %v395_v15  ;;  %vm399_vm2 = vcmp.lt.f32.partialorder %v398_v17, 0.0004427343 }
 0x222   :  { %v397_v20 = vmul.f32 %v729_v13, %v396_v16 }
 0x22d   :  { %v731_v18 = vpop.eup %730 }
 0x22e   :  { %v394_v19 = vmul.f32 0.6931472, %v731_v18 }
 0x230   :  { %v400_v22 = vsel %vm399_vm2, %v397_v20, %v394_v19 }
 0x231   :  { %v401_v23 = vadd.f32 %v400_v22, %v387_v21 }
 0x233   :  { %v402_v24 = vpack.c.bf16 %v401_v23, %v401_v23 }
 0x235   :  { %544 = vmatmul.mubr.bf16.vlgmr.msra.gmra.mxu0 %v402_v24 }
 0x2f5   :  { %v545_v32 = vpop.f32.mrf.mxu0 }
 0x2f6   :  { %v546_v33 = vadd.f32 %v545_v32, %v424_v30 }
 0x2f7   :  { %v547_v34 = vpop.f32.mrf.mxu0 }
 0x2f8   :  { %552 = vst [vmem:[#allocation10] sm:$0xff] %v546_v33  ;;  %v548_v35 = vadd.f32 %v547_v34, %v428_v31 }
 0x2f9   :  { %v549_v36 = vpop.f32.mrf.mxu0 }
 0x2fa   :  { %553 = vst [vmem:[#allocation10 + $0x8] sm:$0xff] %v548_v35 }
 0x2fb   :  { %v550_v37 = vpop.f32.mrf.mxu0 }
 0x2fc   :  { %823 = shalt.err (!%p820_p10)
}
 0x2fd   :  { %563 = dma.vmem_to_hbm [thread:$0]  %s561_s26, 256, %s923_s7, [#allocation4]  }
 0x2fe   :  { %838 = dma.done.wait [#allocation4], 256  }
 0x2ff   :  { %839 = vsyncadd [#allocation4], 4294967040 }
 0x300   :  { %567 = vsyncpa [#allocation3], 1 }
 0x301   :  { %568 = vsyncpa [#allocation6], 1 }
 0x302   :  { %569 = vsyncpa [#allocation9], 1 }
 0x303   :  { %570 = vsyncpa [#allocation4], 1 }

</bundles_post_ra>
